<compile_context>
chip_gen: v7x
topology: tpu7x:2x2x1
jax: 0.10.0
libtpu: 0.0.40
codegen_flags: <defaults>
</compile_context>

<pallas_src>
import math

import jax
import jax.numpy as jnp
from jax.experimental import pallas as pl
from jax.experimental.pallas import tpu as pltpu

_LANE = 128


def _round_up(n, m):
    return ((n + m - 1) // m) * m


def _xavier_uniform(key, out_features, in_features, dtype=jnp.float32):
    """Matches torch.nn.init.xavier_uniform_ (gain=1) on a (out, in) weight."""
    limit = math.sqrt(6.0 / (in_features + out_features))
    return jax.random.uniform(
        key, (out_features, in_features), dtype=dtype, minval=-limit, maxval=limit
    )


def _dqn_kernel(x_ref, w1_ref, b1_ref, w2_ref, b2_ref, w3_ref, b3_ref, o_ref):
    # x_ref: (4, TB) feature-major batch tile (f32).
    x = x_ref[...]
    w1 = w1_ref[...]                                   # (64, 4) f32

    # Layer 1: Linear(4, 64) + ReLU on the VPU as 4 rank-1 broadcast MACs
    # (keeps the K=4 contraction off the MXU result path).
    acc = w1[:, 0:1] * x[0:1, :]                       # (64,1)*(1,TB) -> (64,TB)
    for k in range(1, 4):
        acc = acc + w1[:, k : k + 1] * x[k : k + 1, :]
    h = jnp.maximum(acc + b1_ref[...], 0.0)            # (64, TB) f32

    # Layer 2: Linear(64, 64) + ReLU on the MXU (operands in w2's dtype,
    # normally bf16; accumulation in f32), bias/ReLU in f32.
    h2 = jnp.dot(w2_ref[...], h.astype(w2_ref.dtype),
                 preferred_element_type=jnp.float32)
    h2 = jnp.maximum(h2 + b2_ref[...], 0.0)            # (64, TB) f32

    # Layer 3: Linear(64, 1) as a VPU multiply + sublane (XLU) reduction.
    y = jnp.sum(h2 * w3_ref[...], axis=0, keepdims=True) + b3_ref[...]
    o_ref[...] = y.astype(o_ref.dtype)                 # (1, TB) lane-dense store


def deep_q_network(x, params, *, tile_b=8192, matmul_dtype=jnp.bfloat16):
    """Fused forward pass of DeepQNetwork.

    x: (B, 4) float32
    params: w1 (64,4), b1 (64,1), w2 (64,64), b2 (64,1), w3 (64,1), b3 (1,1)
    returns: (B, 1) float32
    """
    B = x.shape[0]
    w1, b1 = params["w1"], params["b1"]
    w2, b2 = params["w2"], params["b2"]
    w3, b3 = params["w3"], params["b3"]

    # Cast the single MXU weight once in the wrapper (bf16-native MXU path).
    w2 = w2.astype(matmul_dtype)

    # Tiles are always lane-aligned (multiples of 128) -> unmasked loads/stores.
    tile_b = max(_LANE, _round_up(tile_b, _LANE))

    if B <= 2 * _LANE:
        # Small batches: one 128-lane-aligned tile (latency is launch-dominated).
        tile = _round_up(max(B, _LANE), _LANE)
    elif B <= 2 * tile_b:
        # Medium batches: split into ~2 tiles so the "parallel" grid has >= 2
        # steps and v7x's second TensorCore isn't idle.
        tile = _round_up(pl.cdiv(B, 2), _LANE)
    else:
        # Large (replay-buffer) batches: big fixed tiles amortize the ~0.35us
        # per-grid-step overhead.
        tile = tile_b
    b_padded = _round_up(B, tile)
    grid = (b_padded // tile,)

    # Feature-major layout: batch on the 128-lane axis.  allow_input_fusion on
    # this operand lets XLA fuse the transpose/pad into the kernel input.
    xt = x.T                                            # (4, B)
    if b_padded != B:
        xt = jnp.pad(xt, ((0, 0), (0, b_padded - B)))

    # Weights / biases: same full block at every grid step (stay VMEM-resident).
    const = lambda a: pl.BlockSpec(a.shape, lambda i: (0,) * a.ndim)

    flops = 2 * B * (4 * 64 + 64 * 64 + 64)
    bytes_accessed = (
        4 * (4 * B + B)
        + 4 * (64 * 4 + 64 + 64 + 64 + 1)
        + 64 * 64 * jnp.dtype(matmul_dtype).itemsize
    )

    # VMEM budget: dominant consumers at large tiles are the hidden (64, tile)
    # f32 intermediates; budget ~10 of them + double-buffered IO, and cap well
    # below v7x's 64 MiB physical VMEM.
    vmem_limit = int(min(48 << 20, max(16 << 20, 10 * 64 * tile * 4)))

    out = pl.pallas_call(
        _dqn_kernel,
        out_shape=jax.ShapeDtypeStruct((1, b_padded), x.dtype),
        grid=grid,
        in_specs=[
            pl.BlockSpec((4, tile), lambda i: (0, i)),   # x tile (feature-major)
            const(w1), const(b1),
            const(w2), const(b2),
            const(w3), const(b3),
        ],
        out_specs=pl.BlockSpec((1, tile), lambda i: (0, i)),
        compiler_params=pltpu.CompilerParams(
            dimension_semantics=("parallel",),           # batch tiles independent
            vmem_limit_bytes=vmem_limit,
            # Only the x operand benefits: fold transpose/pad into the call.
            allow_input_fusion=[True, False, False, False, False, False, False],
        ),
        cost_estimate=pl.CostEstimate(
            flops=flops, transcendentals=0, bytes_accessed=bytes_accessed
        ),
    )(xt, w1, b1, w2, b2, w3, b3)

    return out[:, :B].T                                  # back to (B, 1)


def init_params(key):
    k1, k2, k3 = jax.random.split(key, 3)
    return {
        # torch nn.Linear stores weight as (out_features, in_features); kept,
        # since the kernel computes W @ x in feature-major form.
        "w1": _xavier_uniform(k1, 64, 4),
        "b1": jnp.zeros((64, 1), jnp.float32),
        "w2": _xavier_uniform(k2, 64, 64),
        "b2": jnp.zeros((64, 1), jnp.float32),
        # conv3 weight is (1, 64) in torch; stored as a (64, 1) column so the
        # kernel can do the VPU multiply + sublane reduction.
        "w3": _xavier_uniform(k3, 1, 64).T,
        "b3": jnp.zeros((1, 1), jnp.float32),
    }


def _reference(x, p):
    """Pure-f32 reference matching the torch module's forward."""
    h = jnp.maximum(x @ p["w1"].T + p["b1"].T, 0.0)
    h = jnp.maximum(h @ p["w2"].T + p["b2"].T, 0.0)
    return h @ p["w3"] + p["b3"]


if __name__ == "__main__":
    key = jax.random.PRNGKey(0)
    k_param, k_x1, k_x2 = jax.random.split(key, 3)

    params = init_params(k_param)

    fwd = jax.jit(lambda xx: deep_q_network(xx, params))
    fwd_f32 = jax.jit(
        lambda xx: deep_q_network(xx, params, matmul_dtype=jnp.float32)
    )

    # Small batch (single 128-lane-aligned tile); input features = 4.
    x_small = jax.random.normal(k_x1, (8, 4), dtype=jnp.float32)
    ref_small = _reference(x_small, params)

    y_small = jax.block_until_ready(fwd(x_small))
    assert y_small.shape == (8, 1), y_small.shape
    # Default path uses bf16 MXU operands -> loose tolerance vs f32 reference.
    assert jnp.allclose(y_small, ref_small, atol=1e-1, rtol=1e-1)

    # Exact-parity path (f32 MXU operands) matches the f32 reference tightly.
    y_small_f32 = jax.block_until_ready(fwd_f32(x_small))
    assert jnp.allclose(y_small_f32, ref_small, atol=1e-4, rtol=1e-4)

    # Medium batch: exercises ragged lane padding + a 2-step "parallel" grid.
    x_med = jax.random.normal(k_x2, (384, 4), dtype=jnp.float32)
    y_med = jax.block_until_ready(fwd(x_med))
    assert y_med.shape == (384, 1), y_med.shape
    assert jnp.allclose(y_med, _reference(x_med, params), atol=1e-1, rtol=1e-1)

    print("KERNEL_OK")
</pallas_src>

<mosaic_0001>
module attributes {stable_mosaic.version = 11 : i64} {
  func.func @_dqn_kernel(%arg0: i32, %arg1: memref<4x128xf32, #tpu.memory_space<vmem>>, %arg2: memref<64x4xf32, #tpu.memory_space<vmem>>, %arg3: memref<64x1xf32, #tpu.memory_space<vmem>>, %arg4: memref<64x64xbf16, #tpu.memory_space<vmem>>, %arg5: memref<64x1xf32, #tpu.memory_space<vmem>>, %arg6: memref<64x1xf32, #tpu.memory_space<vmem>>, %arg7: memref<1x1xf32, #tpu.memory_space<vmem>>, %arg8: memref<1x128xf32, #tpu.memory_space<vmem>>) attributes {dimension_semantics = [#tpu.dimension_semantics<parallel>], iteration_bounds = array<i64: 1>, scalar_prefetch = 0 : i64, scratch_operands = 0 : i64, tpu.core_type = #tpu.core_type<tc>, window_params = [{transform_indices = @transform_0, window_bounds = array<i64: 4, 128>}, {pipeline_mode = #tpu.pipeline_mode<synchronous>, transform_indices = @transform_1, window_bounds = array<i64: 64, 4>}, {pipeline_mode = #tpu.pipeline_mode<synchronous>, transform_indices = @transform_2, window_bounds = array<i64: 64, 1>}, {pipeline_mode = #tpu.pipeline_mode<synchronous>, transform_indices = @transform_3, window_bounds = array<i64: 64, 64>}, {pipeline_mode = #tpu.pipeline_mode<synchronous>, transform_indices = @transform_4, window_bounds = array<i64: 64, 1>}, {pipeline_mode = #tpu.pipeline_mode<synchronous>, transform_indices = @transform_5, window_bounds = array<i64: 64, 1>}, {pipeline_mode = #tpu.pipeline_mode<synchronous>, transform_indices = @transform_6, window_bounds = array<i64: 1, 1>}, {transform_indices = @transform_7, window_bounds = array<i64: 1, 128>}]} {
    %c0 = arith.constant 0 : index
    %c0_0 = arith.constant 0 : index
    %0 = vector.load %arg1[%c0, %c0_0] : memref<4x128xf32, #tpu.memory_space<vmem>>, vector<4x128xf32>
    %c0_1 = arith.constant 0 : index
    %c0_2 = arith.constant 0 : index
    %1 = vector.load %arg2[%c0_1, %c0_2] : memref<64x4xf32, #tpu.memory_space<vmem>>, vector<64x4xf32>
    %2 = vector.extract_strided_slice %1 {offsets = [0, 0], sizes = [64, 1], strides = [1, 1]} : vector<64x4xf32> to vector<64x1xf32>
    %3 = vector.extract_strided_slice %0 {offsets = [0, 0], sizes = [1, 128], strides = [1, 1]} : vector<4x128xf32> to vector<1x128xf32>
    %4 = vector.broadcast %2 : vector<64x1xf32> to vector<64x128xf32>
    %5 = vector.broadcast %3 : vector<1x128xf32> to vector<64x128xf32>
    %6 = arith.mulf %4, %5 : vector<64x128xf32>
    %7 = vector.extract_strided_slice %1 {offsets = [0, 1], sizes = [64, 1], strides = [1, 1]} : vector<64x4xf32> to vector<64x1xf32>
    %8 = vector.extract_strided_slice %0 {offsets = [1, 0], sizes = [1, 128], strides = [1, 1]} : vector<4x128xf32> to vector<1x128xf32>
    %9 = vector.broadcast %7 : vector<64x1xf32> to vector<64x128xf32>
    %10 = vector.broadcast %8 : vector<1x128xf32> to vector<64x128xf32>
    %11 = arith.mulf %9, %10 : vector<64x128xf32>
    %12 = arith.addf %6, %11 : vector<64x128xf32>
    %13 = vector.extract_strided_slice %1 {offsets = [0, 2], sizes = [64, 1], strides = [1, 1]} : vector<64x4xf32> to vector<64x1xf32>
    %14 = vector.extract_strided_slice %0 {offsets = [2, 0], sizes = [1, 128], strides = [1, 1]} : vector<4x128xf32> to vector<1x128xf32>
    %15 = vector.broadcast %13 : vector<64x1xf32> to vector<64x128xf32>
    %16 = vector.broadcast %14 : vector<1x128xf32> to vector<64x128xf32>
    %17 = arith.mulf %15, %16 : vector<64x128xf32>
    %18 = arith.addf %12, %17 : vector<64x128xf32>
    %19 = vector.extract_strided_slice %1 {offsets = [0, 3], sizes = [64, 1], strides = [1, 1]} : vector<64x4xf32> to vector<64x1xf32>
    %20 = vector.extract_strided_slice %0 {offsets = [3, 0], sizes = [1, 128], strides = [1, 1]} : vector<4x128xf32> to vector<1x128xf32>
    %21 = vector.broadcast %19 : vector<64x1xf32> to vector<64x128xf32>
    %22 = vector.broadcast %20 : vector<1x128xf32> to vector<64x128xf32>
    %23 = arith.mulf %21, %22 : vector<64x128xf32>
    %24 = arith.addf %18, %23 : vector<64x128xf32>
    %c0_3 = arith.constant 0 : index
    %c0_4 = arith.constant 0 : index
    %25 = vector.load %arg3[%c0_3, %c0_4] : memref<64x1xf32, #tpu.memory_space<vmem>>, vector<64x1xf32>
    %26 = vector.broadcast %25 : vector<64x1xf32> to vector<64x128xf32>
    %27 = arith.addf %24, %26 : vector<64x128xf32>
    %cst = arith.constant 0.000000e+00 : f32
    %28 = vector.broadcast %cst : f32 to vector<64x128xf32>
    %29 = arith.maximumf %27, %28 : vector<64x128xf32>
    %c0_5 = arith.constant 0 : index
    %c0_6 = arith.constant 0 : index
    %30 = vector.load %arg4[%c0_5, %c0_6] : memref<64x64xbf16, #tpu.memory_space<vmem>>, vector<64x64xbf16>
    %31 = arith.truncf %29 : vector<64x128xf32> to vector<64x128xbf16>
    %cst_7 = arith.constant dense<0.000000e+00> : vector<64x128xf32>
    %32 = tpu.matmul %30, %31, %cst_7 {dimension_numbers = #tpu.dot_dimension_numbers<[1], [0], [0], [1], [0, 0, 1, 1], [], []>} : vector<64x64xbf16>, vector<64x128xbf16>, vector<64x128xf32> -> vector<64x128xf32>
    %c0_8 = arith.constant 0 : index
    %c0_9 = arith.constant 0 : index
    %33 = vector.load %arg5[%c0_8, %c0_9] : memref<64x1xf32, #tpu.memory_space<vmem>>, vector<64x1xf32>
    %34 = vector.broadcast %33 : vector<64x1xf32> to vector<64x128xf32>
    %35 = arith.addf %32, %34 : vector<64x128xf32>
    %cst_10 = arith.constant 0.000000e+00 : f32
    %36 = vector.broadcast %cst_10 : f32 to vector<64x128xf32>
    %37 = arith.maximumf %35, %36 : vector<64x128xf32>
    %c0_11 = arith.constant 0 : index
    %c0_12 = arith.constant 0 : index
    %38 = vector.load %arg6[%c0_11, %c0_12] : memref<64x1xf32, #tpu.memory_space<vmem>>, vector<64x1xf32>
    %39 = vector.broadcast %38 : vector<64x1xf32> to vector<64x128xf32>
    %40 = arith.mulf %37, %39 : vector<64x128xf32>
    %cst_13 = arith.constant dense<0.000000e+00> : vector<128xf32>
    %41 = vector.multi_reduction <add>, %40, %cst_13 [0] : vector<64x128xf32> to vector<128xf32>
    %42 = vector.shape_cast %41 : vector<128xf32> to vector<1x128xf32>
    %c0_14 = arith.constant 0 : index
    %c0_15 = arith.constant 0 : index
    %43 = vector.load %arg7[%c0_14, %c0_15] : memref<1x1xf32, #tpu.memory_space<vmem>>, vector<1x1xf32>
    %44 = vector.broadcast %43 : vector<1x1xf32> to vector<1x128xf32>
    %45 = arith.addf %42, %44 : vector<1x128xf32>
    %c0_16 = arith.constant 0 : index
    %c0_17 = arith.constant 0 : index
    %46 = vector.load %arg8[%c0_16, %c0_17] : memref<1x128xf32, #tpu.memory_space<vmem>>, vector<1x128xf32>
    tpu.vector_store %arg8[%c0_16, %c0_17], %45 {strides = array<i32>} : memref<1x128xf32, #tpu.memory_space<vmem>>, vector<1x128xf32>,
    return
  }
  func.func @transform_0(%arg0: i32) -> (i32, i32) {
    %c0_i32 = arith.constant 0 : i32
    %c0_i32_0 = arith.constant 0 : i32
    return %c0_i32, %arg0 : i32, i32
  }
  func.func @transform_1(%arg0: i32) -> (i32, i32) {
    %c0_i32 = arith.constant 0 : i32
    %c0_i32_0 = arith.constant 0 : i32
    %c0_i32_1 = arith.constant 0 : i32
    return %c0_i32, %c0_i32_0 : i32, i32
  }
  func.func @transform_2(%arg0: i32) -> (i32, i32) {
    %c0_i32 = arith.constant 0 : i32
    %c0_i32_0 = arith.constant 0 : i32
    %c0_i32_1 = arith.constant 0 : i32
    return %c0_i32, %c0_i32_0 : i32, i32
  }
  func.func @transform_3(%arg0: i32) -> (i32, i32) {
    %c0_i32 = arith.constant 0 : i32
    %c0_i32_0 = arith.constant 0 : i32
    %c0_i32_1 = arith.constant 0 : i32
    return %c0_i32, %c0_i32_0 : i32, i32
  }
  func.func @transform_4(%arg0: i32) -> (i32, i32) {
    %c0_i32 = arith.constant 0 : i32
    %c0_i32_0 = arith.constant 0 : i32
    %c0_i32_1 = arith.constant 0 : i32
    return %c0_i32, %c0_i32_0 : i32, i32
  }
  func.func @transform_5(%arg0: i32) -> (i32, i32) {
    %c0_i32 = arith.constant 0 : i32
    %c0_i32_0 = arith.constant 0 : i32
    %c0_i32_1 = arith.constant 0 : i32
    return %c0_i32, %c0_i32_0 : i32, i32
  }
  func.func @transform_6(%arg0: i32) -> (i32, i32) {
    %c0_i32 = arith.constant 0 : i32
    %c0_i32_0 = arith.constant 0 : i32
    %c0_i32_1 = arith.constant 0 : i32
    return %c0_i32, %c0_i32_0 : i32, i32
  }
  func.func @transform_7(%arg0: i32) -> (i32, i32) {
    %c0_i32 = arith.constant 0 : i32
    %c0_i32_0 = arith.constant 0 : i32
    return %c0_i32, %arg0 : i32, i32
  }
}

</mosaic_0001>

<bundles_post_ra>
// kernel: _lambda_.2
= control target key start
LH: loop header
LB: loop body
LE: loop exit
PB: predicated region body
PF: predicated region fallthrough
CT: control target
= control target key end

     0   :  { %s927_s0 = inlined_call_operand.hbm [shape: f32[64,4], index: 0, kind: input, shape index: {}]   ;;  %s928_s1 = inlined_call_operand.vmem [shape: f32[64,1], index: 1, kind: input, shape index: {}]   ;;  %s929_s2 = inlined_call_operand.hbm [shape: bf16[64,64], index: 2, kind: input, shape index: {}]   ;;  %s930_s3 = inlined_call_operand.vmem [shape: f32[64,1], index: 3, kind: input, shape index: {}]   ;;  %s931_s4 = inlined_call_operand.<no memory space> [shape: f32[1,1], index: 4, kind: input, shape index: {}]   ;;  %s932_s5 = inlined_call_operand.vmem [shape: f32[4,8], index: 5, kind: input, shape index: {}]   ;;  %s933_s6 = inlined_call_operand.<no memory space> [shape: f32[], index: 6, kind: input, shape index: {}]   ;;  %s934_s7 = inlined_call_operand.vmem [shape: f32[1,128], index: 7, kind: output, shape index: {}]  }
   0x1   :  { %v12_v0 = vstv %s933_s6  ;;  %v13_v1 = vstv %s931_s4 }
   0x2   :  { %14 = vst [vmem:[#allocation7] sm:$0x1] %v13_v1 }
   0x3   :  { %15 = vsyncpa [#allocation9], 0 }
   0x4   :  { %16 = vsyncpa [#allocation11], 0  ;;  %s695_s28 = smov [#allocation8]   ;;  %s647_s9 = scalar_lea.hbm %s927_s0, 1024 }
   0x5   :  { %s24_s29 = sshll.u32 %s695_s28, 4  ;;  %p648_p0 = scmp.ne.s32.totalorder %s927_s0, %s647_s9  ;;  %s25_s29 = int_to_ptr.vmem [resolvable:$true] %s24_s29 }
   0x6   :  { %p651_p1 = scmp.lt.u32.totalorder %s647_s9, %s927_s0 }
   0x8   :  { %p653_p2 = pnand %p651_p1, %p648_p0 }
   0xa   :  { %656 = shalt.err (!%p653_p2)
}
   0xb   :  { %s657_s4 = scalar_lea.vmem %s25_s29, 1024  ;;  %p662_p4 = scmp.lt.s32.totalorder %s25_s29, %s25_s29 }
   0xc   :  { %p658_p3 = scmp.ne.s32.totalorder %s25_s29, %s657_s4  ;;  %p663_p5 = scmp.lt.s32.totalorder %s657_s4, %s657_s4 }
   0xe   :  { %p664_p6 = por %p663_p5, %p662_p4 }
  0x10   :  { %p665_p7 = pnand %p664_p6, %p658_p3 }
  0x12   :  { %668 = shalt.err (!%p665_p7)
}
  0x13   :  { %s696_s14 = smov 128   ;;  %s697_s15 = smov 8  }
  0x14   :  { %30 = dma.hbm_to_vmem [thread:$0]  %s927_s0, 1024, %s25_s29, [#allocation9], %s696_s14, %s696_s14, %s697_s15  }
  0x15   :  { %s698_s18 = smov [#allocation10]   ;;  %s669_s22 = scalar_lea.hbm %s929_s2, 512 }
  0x16   :  { %s38_s19 = sshll.u32 %s698_s18, 4  ;;  %p670_p8 = scmp.ne.s32.totalorder %s929_s2, %s669_s22  ;;  %s39_s19 = int_to_ptr.vmem [resolvable:$true] %s38_s19 }
  0x17   :  { %p673_p9 = scmp.lt.u32.totalorder %s669_s22, %s929_s2 }
  0x19   :  { %p675_p10 = pnand %p673_p9, %p670_p8 }
  0x1b   :  { %678 = shalt.err (!%p675_p10)
}
  0x1c   :  { %s679_s27 = scalar_lea.vmem %s39_s19, 512  ;;  %p684_p12 = scmp.lt.s32.totalorder %s39_s19, %s39_s19 }
  0x1d   :  { %p680_p11 = scmp.ne.s32.totalorder %s39_s19, %s679_s27  ;;  %p685_p13 = scmp.lt.s32.totalorder %s679_s27, %s679_s27 }
  0x1f   :  { %p686_p0 = por %p685_p13, %p684_p12 }
  0x21   :  { %p687_p1 = pnand %p686_p0, %p680_p11 }
  0x23   :  { %690 = shalt.err (!%p687_p1)
}
  0x24   :  { %44 = dma.hbm_to_vmem [thread:$0]  %s929_s2, 512, %s39_s19, [#allocation11], %s696_s14, %s696_s14, %s697_s15  }
  0x25   :  { %691 = dma.done.wait [#allocation9], 1024  }
  0x26   :  { %692 = vsyncadd [#allocation9], 4294966272 }
  0x27   :  { %693 = dma.done.wait [#allocation11], 512  }
  0x28   :  { %694 = vsyncadd [#allocation11], 4294966784  ;;  %v699_v2 = vmov 1   ;;  %v58_v3 = vlaneseq  ;;  %v76_v4 = vld [vmem:[#allocation8 + $0x20] sm:$0xff]  ;;  %v73_v8 = vld [vmem:[#allocation8 + $0x8] sm:$0xff]  ;;  %v700_v9 = vmov 2  }
  0x29   :  { %632 = vset.pattern.permute.xlu0 %v699_v2  ;;  %625 = vset.pattern.permute.xlu1 %v699_v2  ;;  %v72_v5 = vld [vmem:[#allocation8] sm:$0xff]  ;;  %v75_v11 = vld [vmem:[#allocation8 + $0x18] sm:$0xff]  ;;  %v74_v14 = vld [vmem:[#allocation8 + $0x10] sm:$0xff]  ;;  %v701_v15 = vmov 0   ;;  %v702_v16 = vmov 3   ;;  %vm408_vm2 = vcmask 523264  }
  0x2a   :  { %v775_v6 = vshrl.u32 %v58_v3, 7  ;;  %149 = vperm.xlu0 %632, %v76_v4   ;;  %133 = vperm.xlu1 %625, %v72_v5   ;;  %v64_v7 = vand.u32 127, %v58_v3  ;;  %v57_v10 = vld [vmem:[%s932_s5] sm:$0xf]  ;;  %v78_v17 = vld [vmem:[#allocation8 + $0x30] sm:$0xff]  ;;  %v77_v18 = vld [vmem:[#allocation8 + $0x28] sm:$0xff] }
  0x2b   :  { %v79_v19 = vld [vmem:[#allocation8 + $0x38] sm:$0xff]  ;;  %v293_v21 = vld [vmem:[%s928_s1 + $0x28] sm:$0xff]  ;;  %v362_v24 = vld [vmem:[%s928_s1 + $0x10] sm:$0xff] }
  0x2c   :  { %vm61_vm0 = vcmp.lt.s32.totalorder %v775_v6, 4  ;;  %vm66_vm1 = vcmp.lt.s32.totalorder %v64_v7, 8  ;;  %v291_v20 = vld [vmem:[%s928_s1 + $0x18] sm:$0xff]  ;;  %v288_v22 = vld [vmem:[%s928_s1] sm:$0xff]  ;;  %v289_v23 = vld [vmem:[%s928_s1 + $0x8] sm:$0xff]  ;;  %v166_v31 = vsub.s32 1, %v775_v6 }
  0x2d   :  { %v62_v12 = vsel %vm61_vm0, %v57_v10, %v12_v0  ;;  %v494_v25 = vld [vmem:[%s930_s3] sm:$0xff]  ;;  %v366_v27 = vld [vmem:[%s928_s1 + $0x30] sm:$0xff]  ;;  %v367_v28 = vld [vmem:[%s928_s1 + $0x38] sm:$0xff]  ;;  %v218_v44 = vsub.s32 2, %v775_v6  ;;  %v270_v56 = vsub.s32 3, %v775_v6  ;;  %v122_v1 = vsub.s32 0, %v775_v6 }
  0x2e   :  { %633 = vset.pattern.permute.xlu0 %v700_v9  ;;  %137 = vperm.xlu1 %625, %v73_v8   ;;  %v67_v13 = vsel %vm66_vm1, %v62_v12, %v12_v0  ;;  %v364_v26 = vld [vmem:[%s928_s1 + $0x20] sm:$0xff]  ;;  %v500_v29 = vld [vmem:[%s930_s3 + $0x30] sm:$0xff]  ;;  %v495_v36 = vld [vmem:[%s930_s3 + $0x8] sm:$0xff] }
  0x2f   :  { %185 = vperm.xlu0 %633, %v72_v5   ;;  %69 = vst [vmem:[#allocation12] sm:$0xf] %v67_v13  ;;  %v563_v30 = vld [vmem:[#allocation7] sm:$0x1]  ;;  %v352_v33 = vld [vmem:[#allocation10] sm:$0xff]  ;;  %v354_v34 = vld [vmem:[#allocation10 + $0x10] sm:$0xff] }
  0x30   :  { %601 = vmatprep.mubr.msk.bf16.mxu0 %vm408_vm2, %v352_v33  ;;  %605 = vmatprep.mubr.msk.bf16.mxu1 %vm408_vm2, %v354_v34  ;;  %v496_v40 = vld [vmem:[%s930_s3 + $0x10] sm:$0xff]  ;;  %v497_v43 = vld [vmem:[%s930_s3 + $0x18] sm:$0xff]  ;;  %v498_v47 = vld [vmem:[%s930_s3 + $0x20] sm:$0xff] }
  0x31   :  { %v499_v52 = vld [vmem:[%s930_s3 + $0x28] sm:$0xff]  ;;  %v501_v55 = vld [vmem:[%s930_s3 + $0x38] sm:$0xff] }
  0x32   :  { %626 = vset.pattern.permute.xlu1 %v700_v9 }
  0x33   :  { %197 = vperm.xlu0 %633, %v75_v11   ;;  %189 = vperm.xlu1 %626, %v73_v8  }
  0x36   :  { %v71_v32 = vld [vmem:[#allocation12] sm:$0xf] }
  0x37   :  { %201 = vperm.xlu0 %633, %v76_v4   ;;  %627 = vset.pattern.permute.xlu1 %v701_v15  ;;  %v841_v35 = vrot.slane %v71_v32, %v166_v31  ;;  %v860_v48 = vrot.slane %v71_v32, %v218_v44  ;;  %v872_v59 = vrot.slane %v71_v32, %v270_v56 }
  0x38   :  { %92 = vperm.xlu1 %627, %v74_v14   ;;  %v881_v3 = vrot.slane %v71_v32, %v122_v1 }
  0x3b   :  { %637 = vset.pattern.permute.xlu0 %v702_v16 }
  0x3c   :  { %237 = vperm.xlu0 %637, %v72_v5   ;;  %628 = vset.pattern.permute.xlu1 %v699_v2 }
  0x3d   :  { %141 = vperm.xlu1 %628, %v74_v14  }
  0x40   :  { %249 = vperm.xlu0 %637, %v75_v11  }
  0x41   :  { %145 = vperm.xlu1 %628, %v75_v11  }
  0x44   :  { %253 = vperm.xlu0 %637, %v76_v4  }
  0x45   :  { %629 = vset.pattern.permute.xlu1 %v702_v16 }
  0x46   :  { %241 = vperm.xlu1 %629, %v73_v8  }
  0x48   :  { %261 = vperm.xlu0 %637, %v78_v17  }
  0x4a   :  { %630 = vset.pattern.permute.xlu1 %v700_v9 }
  0x4b   :  { %193 = vperm.xlu1 %630, %v74_v14  }
  0x4c   :  { %644 = vset.pattern.permute.xlu0 %v701_v15 }
  0x4d   :  { %82 = vperm.xlu0 %644, %v72_v5  }
  0x4f   :  { %631 = vset.pattern.permute.xlu1 %v701_v15 }
  0x50   :  { %102 = vperm.xlu1 %631, %v76_v4  }
  0x51   :  { %87 = vperm.xlu0 %644, %v73_v8  }
  0x54   :  { %107 = vperm.xlu1 %631, %v77_v18  }
  0x55   :  { %97 = vperm.xlu0 %644, %v75_v11  }
  0x58   :  { %634 = vset.pattern.permute.xlu1 %v699_v2 }
  0x59   :  { %117 = vperm.xlu0 %644, %v79_v19   ;;  %153 = vperm.xlu1 %634, %v77_v18  }
  0x5d   :  { %313 = vperm.xlu0 %644, %v291_v20   ;;  %635 = vset.pattern.permute.xlu1 %v702_v16 }
  0x5e   :  { %245 = vperm.xlu1 %635, %v74_v14  }
  0x61   :  { %323 = vperm.xlu0 %644, %v293_v21  }
  0x62   :  { %636 = vset.pattern.permute.xlu1 %v701_v15 }
  0x63   :  { %298 = vperm.xlu1 %636, %v288_v22  }
  0x65   :  { %370 = vperm.xlu0 %644, %v288_v22  }
  0x67   :  { %303 = vperm.xlu1 %636, %v289_v23  }
  0x69   :  { %380 = vperm.xlu0 %644, %v362_v24  }
  0x6b   :  { %638 = vset.pattern.permute.xlu1 %v700_v9 }
  0x6c   :  { %205 = vperm.xlu1 %638, %v77_v18  }
  0x6d   :  { %504 = vperm.xlu0 %644, %v494_v25  }
  0x70   :  { %639 = vset.pattern.permute.xlu1 %v701_v15 }
  0x71   :  { %112 = vperm.xlu1 %639, %v78_v17   ;;  %390 = vperm.xlu0 %644, %v364_v26  }
  0x75   :  { %640 = vset.pattern.permute.xlu1 %v699_v2  ;;  %395 = vperm.xlu0 %644, %v293_v21  }
  0x76   :  { %157 = vperm.xlu1 %640, %v78_v17  }
  0x79   :  { %400 = vperm.xlu0 %644, %v366_v27  }
  0x7a   :  { %161 = vperm.xlu1 %640, %v79_v19  }
  0x7d   :  { %405 = vperm.xlu0 %644, %v367_v28  }
  0x7e   :  { %641 = vset.pattern.permute.xlu1 %v702_v16 }
  0x7f   :  { %257 = vperm.xlu1 %641, %v77_v18  }
  0x81   :  { %534 = vperm.xlu0 %644, %v500_v29  }
  0x83   :  { %642 = vset.pattern.permute.xlu1 %v701_v15 }
  0x84   :  { %308 = vperm.xlu1 %642, %v362_v24  }
  0x85   :  { %566 = vperm.xlu0 %644, %v563_v30  }
  0x88   :  { %643 = vset.pattern.permute.xlu1 %v700_v9 }
  0x89   :  { %209 = vperm.xlu1 %643, %v78_v17  }
  0x8d   :  { %213 = vperm.xlu1 %643, %v79_v19  }
  0x91   :  { %645 = vset.pattern.permute.xlu1 %v702_v16 }
  0x92   :  { %265 = vperm.xlu1 %645, %v79_v19  }
  0x96   :  { %646 = vset.pattern.permute.xlu1 %v701_v15 }
  0x97   :  { %318 = vperm.xlu1 %646, %v364_v26  }
  0x9b   :  { %328 = vperm.xlu1 %646, %v366_v27  }
  0x9f   :  { %333 = vperm.xlu1 %646, %v367_v28  }
  0xa3   :  { %375 = vperm.xlu1 %646, %v289_v23  }
  0xa7   :  { %385 = vperm.xlu1 %646, %v291_v20  }
  0xa9   :  { %v134_v37 = vpop.permute.xlu1 %133  ;;  %v150_v38 = vpop.permute.xlu0 %149 }
  0xaa   :  { %v172_v39 = vmul.f32 %v841_v35, %v150_v38  ;;  %v168_v15 = vmul.f32 %v841_v35, %v134_v37 }
  0xab   :  { %509 = vperm.xlu1 %646, %v495_v36  }
  0xad   :  { %v138_v41 = vpop.permute.xlu1 %137 }
  0xae   :  { %v186_v42 = vpop.permute.xlu0 %185  ;;  %v169_v17 = vmul.f32 %v841_v35, %v138_v41 }
  0xaf   :  { %514 = vperm.xlu1 %646, %v496_v40   ;;  %v220_v18 = vmul.f32 %v860_v48, %v186_v42 }
  0xb2   :  { %v190_v45 = vpop.permute.xlu1 %189  ;;  %v855_v46 = vpop.permute.xlu0 %197 }
  0xb3   :  { %519 = vperm.xlu1 %646, %v497_v43   ;;  %v221_v22 = vmul.f32 %v860_v48, %v190_v45  ;;  %v223_v43 = vmul.f32 %v860_v48, %v855_v46 }
  0xb6   :  { %v202_v49 = vpop.permute.xlu0 %201 }
  0xb7   :  { %524 = vperm.xlu1 %646, %v498_v47   ;;  %v862_v50 = vpop.permute.xlu1 %92  ;;  %v224_v51 = vmul.f32 %v860_v48, %v202_v49 }
  0xbb   :  { %529 = vperm.xlu1 %646, %v499_v52   ;;  %v238_v53 = vpop.permute.xlu0 %237 }
  0xbc   :  { %v142_v54 = vpop.permute.xlu1 %141  ;;  %v272_v23 = vmul.f32 %v872_v59, %v238_v53  ;;  %v126_v53 = vmul.f32 %v881_v3, %v862_v50 }
  0xbd   :  { %v170_v49 = vmul.f32 %v841_v35, %v142_v54 }
  0xbf   :  { %539 = vperm.xlu1 %646, %v501_v55   ;;  %v250_v57 = vpop.permute.xlu0 %249  ;;  %v178_v56 = vadd.f32 %v170_v49, %v126_v53 }
  0xc0   :  { %v146_v58 = vpop.permute.xlu1 %145 }
  0xc1   :  { %v171_v41 = vmul.f32 %v841_v35, %v146_v58 }
  0xc3   :  { %v254_v60 = vpop.permute.xlu0 %253 }
  0xc4   :  { %v276_v61 = vmul.f32 %v872_v59, %v254_v60 }
  0xc5   :  { %v242_v62 = vpop.permute.xlu1 %241 }
  0xc6   :  { %v273_v27 = vmul.f32 %v872_v59, %v242_v62 }
  0xc7   :  { %v262_v63 = vpop.permute.xlu0 %261 }
  0xc8   :  { %v876_v0 = vmul.f32 %v872_v59, %v262_v63 }
  0xca   :  { %v194_v2 = vpop.permute.xlu1 %193 }
  0xcb   :  { %v222_v55 = vmul.f32 %v860_v48, %v194_v2 }
  0xcc   :  { %v83_v5 = vpop.permute.xlu0 %82 }
  0xcd   :  { %v124_v13 = vmul.f32 %v881_v3, %v83_v5  ;;  %v230_v46 = vadd.f32 %v222_v55, %v178_v56 }
  0xcf   :  { %v103_v4 = vpop.permute.xlu1 %102  ;;  %v176_v19 = vadd.f32 %v168_v15, %v124_v13 }
  0xd0   :  { %v128_v7 = vmul.f32 %v881_v3, %v103_v4  ;;  %v88_v11 = vpop.permute.xlu0 %87 }
  0xd1   :  { %v125_v16 = vmul.f32 %v881_v3, %v88_v11  ;;  %v228_v24 = vadd.f32 %v220_v18, %v176_v19 }
  0xd2   :  { %v180_v8 = vadd.f32 %v172_v39, %v128_v7 }
  0xd3   :  { %v884_v9 = vpop.permute.xlu1 %107  ;;  %v177_v20 = vadd.f32 %v169_v17, %v125_v16  ;;  %v280_v28 = vadd.f32 %v272_v23, %v228_v24 }
  0xd4   :  { %v232_v10 = vadd.f32 %v224_v51, %v180_v8  ;;  %v98_v38 = vpop.permute.xlu0 %97  ;;  %v275_v51 = vmul.f32 %v872_v59, %v250_v57  ;;  %v129_v16 = vmul.f32 %v881_v3, %v884_v9 }
  0xd5   :  { %v229_v25 = vadd.f32 %v221_v22, %v177_v20  ;;  %v127_v40 = vmul.f32 %v881_v3, %v98_v38 }
  0xd6   :  { %v886_v12 = vadd.f32 %v276_v61, %v232_v10 }
  0xd7   :  { %v281_v30 = vadd.f32 %v273_v27, %v229_v25  ;;  %v179_v44 = vadd.f32 %v171_v41, %v127_v40 }
  0xd8   :  { %v154_v14 = vpop.permute.xlu1 %153  ;;  %v118_v45 = vpop.permute.xlu0 %117 }
  0xd9   :  { %v231_v52 = vadd.f32 %v223_v43, %v179_v44  ;;  %v173_v2 = vmul.f32 %v841_v35, %v154_v14 }
  0xdb   :  { %v283_v60 = vadd.f32 %v275_v51, %v231_v52  ;;  %v181_v20 = vadd.f32 %v173_v2, %v129_v16 }
  0xdc   :  { %v314_v62 = vpop.permute.xlu0 %313 }
  0xdd   :  { %v246_v21 = vpop.permute.xlu1 %245  ;;  %v339_v63 = vadd.f32 %v314_v62, %v283_v60 }
  0xde   :  { %v274_v58 = vmul.f32 %v872_v59, %v246_v21 }
  0xdf   :  { %v347_v57 = vmax.f32 %v339_v63, 0.0 }
  0xe0   :  { %v282_v4 = vadd.f32 %v274_v58, %v230_v46  ;;  %v324_v25 = vpop.permute.xlu0 %323 }
  0xe2   :  { %v299_v26 = vpop.permute.xlu1 %298 }
  0xe3   :  { %v336_v29 = vadd.f32 %v299_v26, %v280_v28  ;;  %v131_v26 = vmul.f32 %v881_v3, %v118_v45 }
  0xe5   :  { %v344_v33 = vmax.f32 %v336_v29, 0.0 }
  0xe6   :  { %v304_v31 = vpop.permute.xlu1 %303 }
  0xe7   :  { %v337_v32 = vadd.f32 %v304_v31, %v281_v30 }
  0xe9   :  { %v345_v34 = vmax.f32 %v337_v32, 0.0 }
  0xeb   :  { %v356_v36 = vpack.c.bf16 %v345_v34, %v344_v33  ;;  %v206_v37 = vpop.permute.xlu1 %205 }
  0xec   :  { %v225_v17 = vmul.f32 %v860_v48, %v206_v37 }
  0xed   :  { %593 = vmatprep.subr.bf16.mxu0 %v356_v36  ;;  %609 = vmatprep.subr.bf16.mxu1 %v356_v36 }
  0xee   :  { %594 = vmatpush3.bf16.msra.mxu0 %v356_v36  ;;  %613 = vmatpush3.bf16.msra.mxu1 %v356_v36  ;;  %v233_v14 = vadd.f32 %v225_v17, %v181_v20 }
  0xf0   :  { %v113_v39 = vpop.permute.xlu1 %112 }
  0xf1   :  { %v130_v10 = vmul.f32 %v881_v3, %v113_v39 }
  0xf5   :  { %v158_v42 = vpop.permute.xlu1 %157 }
  0xf6   :  { %v174_v54 = vmul.f32 %v841_v35, %v158_v42  ;;  %v371_v42 = vpop.permute.xlu0 %370 }
  0xf8   :  { %v182_v13 = vadd.f32 %v174_v54, %v130_v10 }
  0xf9   :  { %v162_v47 = vpop.permute.xlu1 %161 }
  0xfa   :  { %v175_v27 = vmul.f32 %v841_v35, %v162_v47  ;;  %v381_v44 = vpop.permute.xlu0 %380 }
  0xfc   :  { %v183_v31 = vadd.f32 %v175_v27, %v131_v26 }
  0xfe   :  { %v258_v61 = vpop.permute.xlu1 %257  ;;  %v505_v47 = vpop.permute.xlu0 %504 }
  0xff   :  { %v277_v21 = vmul.f32 %v872_v59, %v258_v61 }
 0x101   :  { %v285_v23 = vadd.f32 %v277_v21, %v233_v14 }
 0x102   :  { %v391_v51 = vpop.permute.xlu0 %390 }
 0x103   :  { %v309_v5 = vpop.permute.xlu1 %308  ;;  %v341_v9 = vadd.f32 %v324_v25, %v285_v23 }
 0x104   :  { %v338_v7 = vadd.f32 %v309_v5, %v282_v4 }
 0x105   :  { %v349_v34 = vmax.f32 %v341_v9, 0.0 }
 0x106   :  { %v346_v8 = vmax.f32 %v338_v7, 0.0  ;;  %v396_v53 = vpop.permute.xlu0 %395 }
 0x108   :  { %v357_v50 = vpack.c.bf16 %v347_v57, %v346_v8  ;;  %v210_v11 = vpop.permute.xlu1 %209 }
 0x109   :  { %v226_v15 = vmul.f32 %v860_v48, %v210_v11 }
 0x10a   :  { %595 = vmatprep.subr.bf16.mxu0 %v357_v50  ;;  %610 = vmatprep.subr.bf16.mxu1 %v357_v50  ;;  %v401_v10 = vpop.permute.xlu0 %400 }
 0x10b   :  { %v234_v18 = vadd.f32 %v226_v15, %v182_v13  ;;  %596 = vmatpush3.bf16.msra.mxu0 %v357_v50  ;;  %614 = vmatpush3.bf16.msra.mxu1 %v357_v50 }
 0x10c   :  { %v214_v19 = vpop.permute.xlu1 %213 }
 0x10d   :  { %v286_v22 = vadd.f32 %v876_v0, %v234_v18  ;;  %v227_v29 = vmul.f32 %v860_v48, %v214_v19 }
 0x10e   :  { %v406_v14 = vpop.permute.xlu0 %405 }
 0x10f   :  { %v235_v36 = vadd.f32 %v227_v29, %v183_v31 }
 0x111   :  { %v266_v24 = vpop.permute.xlu1 %265 }
 0x112   :  { %v279_v32 = vmul.f32 %v872_v59, %v266_v24  ;;  %v353_v59 = vld [vmem:[#allocation10 + $0x8] sm:$0xff] }
 0x114   :  { %v287_v3 = vadd.f32 %v279_v32, %v235_v36 }
 0x116   :  { %v319_v28 = vpop.permute.xlu1 %318 }
 0x117   :  { %v340_v30 = vadd.f32 %v319_v28, %v886_v12  ;;  %v355_v12 = vld [vmem:[#allocation10 + $0x18] sm:$0xff] }
 0x119   :  { %v348_v33 = vmax.f32 %v340_v30, 0.0 }
 0x11a   :  { %v329_v0 = vpop.permute.xlu1 %328 }
 0x11b   :  { %v358_v37 = vpack.c.bf16 %v349_v34, %v348_v33  ;;  %v342_v38 = vadd.f32 %v329_v0, %v286_v22  ;;  %v535_v33 = vpop.permute.xlu0 %534 }
 0x11d   :  { %597 = vmatprep.subr.bf16.mxu0 %v358_v37  ;;  %611 = vmatprep.subr.bf16.mxu1 %v358_v37  ;;  %v350_v40 = vmax.f32 %v342_v38, 0.0 }
 0x11e   :  { %v334_v39 = vpop.permute.xlu1 %333  ;;  %598 = vmatpush3.bf16.msra.mxu0 %v358_v37  ;;  %615 = vmatpush3.bf16.msra.mxu1 %v358_v37 }
 0x11f   :  { %v343_v35 = vadd.f32 %v334_v39, %v287_v3 }
 0x121   :  { %v351_v48 = vmax.f32 %v343_v35, 0.0 }
 0x122   :  { %v376_v43 = vpop.permute.xlu1 %375 }
 0x123   :  { %v359_v41 = vpack.c.bf16 %v351_v48, %v350_v40 }
 0x125   :  { %599 = vmatprep.subr.bf16.mxu0 %v359_v41  ;;  %612 = vmatprep.subr.bf16.mxu1 %v359_v41 }
 0x126   :  { %600 = vmatpush3.bf16.msra.mxu0 %v359_v41  ;;  %616 = vmatpush3.bf16.msra.mxu1 %v359_v41  ;;  %v386_v45 = vpop.permute.xlu1 %385  ;;  %v567_v41 = vpop.permute.xlu0 %566 }
 0x129   :  { %602 = vmatmul.mubr.msk.bf16.vlgmr.msra.gmra.mrb[0].mxu0 %vm408_vm2, %v353_v59  ;;  %606 = vmatmul.mubr.msk.bf16.vlgmr.msra.gmra.mrb[0].mxu1 %vm408_vm2, %v355_v12  ;;  %v572_v12 = vrot.slane %v567_v41, %v122_v1 }
 0x12a   :  { %v510_v49 = vpop.permute.xlu1 %509 }
 0x12e   :  { %v515_v52 = vpop.permute.xlu1 %514 }
 0x132   :  { %v520_v55 = vpop.permute.xlu1 %519 }
 0x136   :  { %v525_v13 = vpop.permute.xlu1 %524 }
 0x13a   :  { %v530_v27 = vpop.permute.xlu1 %529 }
 0x13e   :  { %v540_v36 = vpop.permute.xlu1 %539 }
 0x1fc   :  { %v603_v56 = vpop.f32.mrb[0].mxu0  ;;  %v607_v60 = vpop.f32.mrb[0].mxu1 }
 0x1fd   :  { %v455_v58 = vpop.f32.mrb[1].mxu0  ;;  %v471_v61 = vpop.f32.mrb[1].mxu1  ;;  %v464_v62 = vadd.f32 %v603_v56, %v381_v44  ;;  %v480_v20 = vadd.f32 %v607_v60, %v401_v10 }
 0x1fe   :  { %v456_v46 = vadd.f32 %v455_v58, %v371_v42  ;;  %v604_v63 = vpop.f32.mrb[2].mxu0  ;;  %v608_v4 = vpop.f32.mrb[2].mxu1  ;;  %v472_v11 = vadd.f32 %v471_v61, %v391_v51 }
 0x1ff   :  { %v458_v5 = vpop.f32.mrb[3].mxu0  ;;  %v474_v7 = vpop.f32.mrb[3].mxu1  ;;  %v467_v57 = vadd.f32 %v604_v63, %v386_v45  ;;  %v488_v50 = vmax.f32 %v464_v62, 0.0  ;;  %v483_v24 = vadd.f32 %v608_v4, %v406_v14  ;;  %v492_v9 = vmax.f32 %v480_v20, 0.0 }
 0x200   :  { %v486_v54 = vmax.f32 %v456_v46, 0.0  ;;  %v459_v8 = vadd.f32 %v458_v5, %v376_v43  ;;  %v475_v18 = vadd.f32 %v474_v7, %v396_v53  ;;  %v490_v21 = vmax.f32 %v472_v11, 0.0 }
 0x201   :  { %v489_v16 = vmax.f32 %v467_v57, 0.0  ;;  %v544_v19 = vmul.f32 %v515_v52, %v488_v50  ;;  %v493_v30 = vmax.f32 %v483_v24, 0.0  ;;  %v548_v34 = vmul.f32 %v535_v33, %v492_v9 }
 0x202   :  { %v487_v2 = vmax.f32 %v459_v8, 0.0  ;;  %v542_v15 = vmul.f32 %v505_v47, %v486_v54  ;;  %v491_v26 = vmax.f32 %v475_v18, 0.0  ;;  %v546_v28 = vmul.f32 %v525_v13, %v490_v21 }
 0x203   :  { %v545_v23 = vmul.f32 %v520_v55, %v489_v16  ;;  %v549_v37 = vmul.f32 %v540_v36, %v493_v30 }
 0x204   :  { %v543_v17 = vmul.f32 %v510_v49, %v487_v2  ;;  %v547_v31 = vmul.f32 %v530_v27, %v491_v26 }
 0x206   :  { %v550_v22 = vadd.f32 %v543_v17, %v542_v15 }
 0x208   :  { %v551_v25 = vadd.f32 %v550_v22, %v544_v19 }
 0x20a   :  { %v552_v29 = vadd.f32 %v551_v25, %v545_v23 }
 0x20c   :  { %v553_v32 = vadd.f32 %v552_v29, %v546_v28 }
 0x20e   :  { %v554_v0 = vadd.f32 %v553_v32, %v547_v31 }
 0x210   :  { %v555_v38 = vadd.f32 %v554_v0, %v548_v34 }
 0x212   :  { %v556_v3 = vadd.f32 %v555_v38, %v549_v37 }
 0x214   :  { %v557_v39 = vrot.slane %v556_v3, 4 }
 0x216   :  { %v558_v35 = vadd.f32 %v557_v39, %v556_v3 }
 0x218   :  { %v559_v40 = vrot.slane %v558_v35, 2 }
 0x21a   :  { %v560_v48 = vadd.f32 %v559_v40, %v558_v35 }
 0x21c   :  { %v561_v59 = vrot.slane %v560_v48, 1 }
 0x21e   :  { %v562_v42 = vadd.f32 %v561_v59, %v560_v48 }
 0x220   :  { %v573_v43 = vadd.f32 %v572_v12, %v562_v42 }
 0x222   :  { %574 = vst [vmem:[%s934_s7] sm:$0x1] %v573_v43 }
 0x223   :  { %579 = vsyncpa [#allocation9], 1 }
 0x224   :  { %580 = vsyncpa [#allocation11], 1 }

</bundles_post_ra>
